<compile_context>
chip_gen: v7x
topology: tpu7x:2x2x1
jax: 0.10.0
libtpu: 0.0.40
codegen_flags: <defaults>
</compile_context>

<pallas_src>
import functools

import jax
import jax.numpy as jnp
from jax import lax
from jax.experimental import pallas as pl
from jax.experimental.pallas import tpu as pltpu


def _vmem_capacity_bytes():
    """Physical VMEM of the current TPU generation (128 MiB fallback)."""
    try:
        return int(pltpu.get_tpu_info().vmem_capacity_bytes)
    except Exception:  # non-TPU backend / older jax: assume v5e/v6e-class
        return 128 * 1024 * 1024


def _ce_kernel(logits_ref, tgt_ref, loss_ref, *, num_samples):
    """One grid step = one (batch-row tile, sample-lane tile) block.

    logits_ref : (b_tile, C, s_tile) VMEM tile, native dtype
    tgt_ref    : (b_tile, 1, s_tile) int32 VMEM tile
    loss_ref   : (b_tile, 1, s_tile) f32 output (per-sample loss, 0 in padding)
    """
    s_idx = pl.program_id(1)

    logits = logits_ref[...].astype(jnp.float32)          # (bb, C, T)
    tgt = tgt_ref[...]                                     # (bb, 1, T) int32
    bb, c, t = logits.shape

    # Numerically-stable log-sum-exp over the class (sublane) axis, per lane.
    cmax = jnp.max(logits, axis=1, keepdims=True)          # (bb, 1, T)
    lse = jnp.log(jnp.sum(jnp.exp(logits - cmax), axis=1, keepdims=True)) + cmax

    # Target-logit gather via one-hot select. The (1, C, 1) sublane iota is
    # broadcast inside the compare against the (bb, 1, T) target row -- no
    # (C, T) int32 materialization (pure VPU compare/select + sublane reduce).
    cls_ids = lax.broadcasted_iota(jnp.int32, (1, c, 1), 1)
    tgt_logit = jnp.sum(jnp.where(cls_ids == tgt, logits, 0.0),
                        axis=1, keepdims=True)              # (bb, 1, T)

    per_sample = lse - tgt_logit                            # (bb, 1, T)

    # Mask lanes past the true sample count (ragged last tile reads padding;
    # select() discards any NaN/Inf from garbage lanes).
    lane = lax.broadcasted_iota(jnp.int32, (1, 1, t), 2)
    valid = (s_idx * t + lane) < num_samples
    loss_ref[...] = jnp.where(valid, per_sample, 0.0)


def cross_entropy_loss(inputs, targets, *, s_tile=None, b_tile=None,
                       block_budget_bytes=None, vmem_limit_bytes=None,
                       dimension_semantics=None):
    """inputs: (B, C, S) logits; targets: (B, S) int class ids.

    Matches torch.nn.CrossEntropyLoss()(inputs.transpose(1,2).reshape(-1, C),
                                        targets.view(-1)) -> scalar mean loss.
    """
    b, c, s = inputs.shape
    n_valid = b * s

    # ---- generation-aware byte budgets -------------------------------------
    vmem_cap = _vmem_capacity_bytes()
    small_vmem = vmem_cap < 96 * 1024 * 1024           # v7x-class: 64 MiB/TC
    if vmem_limit_bytes is None:
        vmem_limit_bytes = (44 if small_vmem else 64) * 1024 * 1024
    if block_budget_bytes is None:
        block_budget_bytes = (4 if small_vmem else 8) * 1024 * 1024
    # Budget is counted in f32-equivalent elements so the in-kernel upcast +
    # exp/select temporaries (~2-3x block bytes) stay inside the VMEM limit
    # even for bf16 inputs.
    budget_elems = max(c * 128, block_budget_bytes // 4)

    # ---- tile selection ----------------------------------------------------
    s_pad = pl.cdiv(s, 128) * 128                       # lane-padded sample axis
    if s_tile is None:
        max_lanes = max(128, ((budget_elems // c) // 128) * 128)
        s_tile = min(s_pad, max_lanes)
    s_tile = int(s_tile)
    s_tile = -(-s_tile // 128) * 128                    # round up to lane width
    s_tile = max(128, min(s_tile, s_pad))

    if b_tile is None:
        b_tile = 1
        if s_tile >= s_pad:
            # Whole sample axis fits in one lane tile: pack batch rows per
            # block up to the byte budget (largest divisor of B that fits).
            max_bb = max(1, budget_elems // (c * s_tile))
            for d in range(min(b, max_bb), 0, -1):
                if b % d == 0:
                    b_tile = d
                    break
    b_tile = int(b_tile)
    assert b % b_tile == 0, "b_tile must divide the batch size"

    n_s = pl.cdiv(s, s_tile)
    n_b = b // b_tile

    if dimension_semantics is None:
        # Every grid step writes a distinct output block -> fully parallel.
        # (On v7x, pass (pltpu.CORE_PARALLEL, pltpu.PARALLEL) to engage both
        #  TensorCores -- see TODO at top of file.)
        dimension_semantics = ("parallel", "parallel")

    # Free metadata reshape: targets become (B, 1, S) so blocks are lane-dense.
    tgt = targets.reshape(b, 1, s).astype(jnp.int32)

    kernel = functools.partial(_ce_kernel, num_samples=s)

    per_sample = pl.pallas_call(
        kernel,
        out_shape=jax.ShapeDtypeStruct((b, 1, n_s * s_tile), jnp.float32),
        grid_spec=pltpu.PrefetchScalarGridSpec(
            num_scalar_prefetch=0,
            grid=(n_b, n_s),
            in_specs=[
                pl.BlockSpec((b_tile, c, s_tile), lambda bi, si: (bi, 0, si)),
                pl.BlockSpec((b_tile, 1, s_tile), lambda bi, si: (bi, 0, si)),
            ],
            out_specs=pl.BlockSpec((b_tile, 1, s_tile),
                                   lambda bi, si: (bi, 0, si)),
        ),
        compiler_params=pltpu.CompilerParams(
            dimension_semantics=dimension_semantics,
            vmem_limit_bytes=vmem_limit_bytes,
        ),
    )(inputs, tgt)

    # Padded lanes were written as 0, so a plain sum over the padded slab is
    # exact; mean over the true number of samples.
    return jnp.sum(per_sample) / jnp.float32(n_valid)


if __name__ == "__main__":
    # Small shapes consistent with the module: batch=2, num_classes=16,
    # samples=300 (non-multiple of 128 to exercise the ragged-lane mask).
    B, C, S = 2, 16, 300
    key = jax.random.PRNGKey(0)
    k1, k2 = jax.random.split(key)
    inputs = jax.random.normal(k1, (B, C, S), dtype=jnp.float32)
    targets = jax.random.randint(k2, (B, S), 0, C, dtype=jnp.int32)

    # Pure-JAX reference.
    logits_flat = jnp.transpose(inputs, (0, 2, 1)).reshape(-1, C)
    tgt_flat = targets.reshape(-1)
    lse_ref = jax.nn.logsumexp(logits_flat, axis=-1)
    ref = jnp.mean(lse_ref - logits_flat[jnp.arange(tgt_flat.shape[0]), tgt_flat])

    # 1) Auto-tiling: b_tile=2, single (2, 16, 384) block, ragged lanes masked.
    loss = cross_entropy_loss(inputs, targets)
    jax.block_until_ready(loss)
    assert jnp.allclose(loss, ref, atol=1e-5, rtol=1e-5), (loss, ref)

    # 2) Forced small tiles: multi-step grid (2, 3) + ragged last lane tile.
    loss2 = cross_entropy_loss(inputs, targets, s_tile=128, b_tile=1)
    jax.block_until_ready(loss2)
    assert jnp.allclose(loss2, ref, atol=1e-5, rtol=1e-5), (loss2, ref)

    print("KERNEL_OK")
</pallas_src>

<mosaic_0001>
module attributes {stable_mosaic.version = 11 : i64} {
  func.func @_ce_kernel(%arg0: i32, %arg1: i32, %arg2: memref<2x16x384xf32, #tpu.memory_space<vmem>>, %arg3: memref<2x1x384xi32, #tpu.memory_space<vmem>>, %arg4: memref<2x1x384xf32, #tpu.memory_space<vmem>>) attributes {dimension_semantics = [#tpu.dimension_semantics<parallel>, #tpu.dimension_semantics<parallel>], iteration_bounds = array<i64: 1, 1>, scalar_prefetch = 0 : i64, scratch_operands = 0 : i64, tpu.core_type = #tpu.core_type<tc>, window_params = [{transform_indices = @transform_0, window_bounds = array<i64: 2, 16, 384>}, {transform_indices = @transform_1, window_bounds = array<i64: 2, 1, 384>}, {transform_indices = @transform_2, window_bounds = array<i64: 2, 1, 384>}]} {
    %c0 = arith.constant 0 : index
    %c0_0 = arith.constant 0 : index
    %c0_1 = arith.constant 0 : index
    %0 = vector.load %arg2[%c0, %c0_0, %c0_1] : memref<2x16x384xf32, #tpu.memory_space<vmem>>, vector<2x16x384xf32>
    %c0_2 = arith.constant 0 : index
    %c0_3 = arith.constant 0 : index
    %c0_4 = arith.constant 0 : index
    %1 = vector.load %arg3[%c0_2, %c0_3, %c0_4] : memref<2x1x384xi32, #tpu.memory_space<vmem>>, vector<2x1x384xi32>
    %cst = arith.constant dense<0xFF800000> : vector<2x384xf32>
    %2 = vector.multi_reduction <maximumf>, %0, %cst [1] : vector<2x16x384xf32> to vector<2x384xf32>
    %3 = vector.shape_cast %2 : vector<2x384xf32> to vector<2x1x384xf32>
    %4 = vector.broadcast %3 : vector<2x1x384xf32> to vector<2x16x384xf32>
    %5 = arith.subf %0, %4 : vector<2x16x384xf32>
    %6 = math.exp %5 : vector<2x16x384xf32>
    %cst_5 = arith.constant dense<0.000000e+00> : vector<2x384xf32>
    %7 = vector.multi_reduction <add>, %6, %cst_5 [1] : vector<2x16x384xf32> to vector<2x384xf32>
    %8 = vector.shape_cast %7 : vector<2x384xf32> to vector<2x1x384xf32>
    %9 = math.log %8 : vector<2x1x384xf32>
    %10 = arith.addf %9, %3 : vector<2x1x384xf32>
    %11 = tpu.iota {dimensions = array<i32: 1>} : vector<1x16x1xi32>
    %12 = vector.broadcast %11 : vector<1x16x1xi32> to vector<2x16x384xi32>
    %13 = vector.broadcast %1 : vector<2x1x384xi32> to vector<2x16x384xi32>
    %14 = arith.cmpi eq, %12, %13 : vector<2x16x384xi32>
    %cst_6 = arith.constant 0.000000e+00 : f32
    %15 = vector.broadcast %cst_6 : f32 to vector<2x16x384xf32>
    %16 = arith.select %14, %0, %15 : vector<2x16x384xi1>, vector<2x16x384xf32>
    %cst_7 = arith.constant dense<0.000000e+00> : vector<2x384xf32>
    %17 = vector.multi_reduction <add>, %16, %cst_7 [1] : vector<2x16x384xf32> to vector<2x384xf32>
    %18 = vector.shape_cast %17 : vector<2x384xf32> to vector<2x1x384xf32>
    %19 = arith.subf %10, %18 : vector<2x1x384xf32>
    %20 = tpu.iota {dimensions = array<i32: 2>} : vector<1x1x384xi32>
    %c384_i32 = arith.constant 384 : i32
    %21 = arith.muli %arg1, %c384_i32 : i32
    %22 = vector.broadcast %21 : i32 to vector<1x1x384xi32>
    %23 = arith.addi %22, %20 : vector<1x1x384xi32>
    %c300_i32 = arith.constant 300 : i32
    %24 = vector.broadcast %c300_i32 : i32 to vector<1x1x384xi32>
    %25 = arith.cmpi slt, %23, %24 : vector<1x1x384xi32>
    %cst_8 = arith.constant 0.000000e+00 : f32
    %26 = vector.shape_cast %25 : vector<1x1x384xi1> to vector<1x1x384xi1>
    %27 = vector.broadcast %26 : vector<1x1x384xi1> to vector<2x1x384xi1>
    %28 = vector.broadcast %cst_8 : f32 to vector<2x1x384xf32>
    %29 = arith.select %27, %19, %28 : vector<2x1x384xi1>, vector<2x1x384xf32>
    %c0_9 = arith.constant 0 : index
    %c0_10 = arith.constant 0 : index
    %c0_11 = arith.constant 0 : index
    %30 = vector.load %arg4[%c0_9, %c0_10, %c0_11] : memref<2x1x384xf32, #tpu.memory_space<vmem>>, vector<2x1x384xf32>
    tpu.vector_store %arg4[%c0_9, %c0_10, %c0_11], %29 {strides = array<i32>} : memref<2x1x384xf32, #tpu.memory_space<vmem>>, vector<2x1x384xf32>,
    return
  }
  func.func @transform_0(%arg0: i32, %arg1: i32) -> (i32, i32, i32) {
    %c0_i32 = arith.constant 0 : i32
    %c0_i32_0 = arith.constant 0 : i32
    return %arg0, %c0_i32, %arg1 : i32, i32, i32
  }
  func.func @transform_1(%arg0: i32, %arg1: i32) -> (i32, i32, i32) {
    %c0_i32 = arith.constant 0 : i32
    %c0_i32_0 = arith.constant 0 : i32
    return %arg0, %c0_i32, %arg1 : i32, i32, i32
  }
  func.func @transform_2(%arg0: i32, %arg1: i32) -> (i32, i32, i32) {
    %c0_i32 = arith.constant 0 : i32
    %c0_i32_0 = arith.constant 0 : i32
    return %arg0, %c0_i32, %arg1 : i32, i32, i32
  }
}

</mosaic_0001>

<bundles_post_ra>
// kernel: tpu_custom_call.1
= control target key start
LH: loop header
LB: loop body
LE: loop exit
PB: predicated region body
PF: predicated region fallthrough
CT: control target
= control target key end

     0   :  { %7 = vsyncpa [#allocation3], 0  ;;  %s696_s0 = inlined_call_operand.hbm [shape: f32[2,16,300], index: 0, kind: input, shape index: {}]   ;;  %s697_s1 = inlined_call_operand.hbm [shape: s32[2,1,300], index: 1, kind: input, shape index: {}]   ;;  %s698_s2 = inlined_call_operand.hbm [shape: f32[2,1,384], index: 2, kind: output, shape index: {}]  }
   0x1   :  { %8 = vsyncpa [#allocation6], 0 }
   0x2   :  { %9 = vsyncpa [#allocation4], 0  ;;  %s509_s9 = smov [#allocation2]   ;;  %s437_s13 = scalar_lea.hbm %s696_s0, 1536 }
   0x3   :  { %s15_s10 = sshll.u32 %s509_s9, 4  ;;  %p438_p0 = scmp.ne.s32.totalorder %s696_s0, %s437_s13  ;;  %s16_s10 = int_to_ptr.vmem [resolvable:$true] %s15_s10 }
   0x4   :  { %p441_p1 = scmp.lt.u32.totalorder %s437_s13, %s696_s0 }
   0x6   :  { %p443_p2 = pnand %p441_p1, %p438_p0 }
   0x8   :  { %446 = shalt.err (!%p443_p2)
}
   0x9   :  { %s447_s18 = scalar_lea.vmem %s16_s10, 1536  ;;  %p452_p4 = scmp.lt.s32.totalorder %s16_s10, %s16_s10 }
   0xa   :  { %p448_p3 = scmp.ne.s32.totalorder %s16_s10, %s447_s18  ;;  %p453_p5 = scmp.lt.s32.totalorder %s447_s18, %s447_s18 }
   0xc   :  { %p454_p6 = por %p453_p5, %p452_p4 }
   0xe   :  { %p455_p7 = pnand %p454_p6, %p448_p3 }
  0x10   :  { %458 = shalt.err (!%p455_p7)
}
  0x11   :  { %s510_s19 = smov 384   ;;  %s511_s20 = smov 24  }
  0x12   :  { %21 = dma.hbm_to_vmem [thread:$0]  %s696_s0, 1536, %s16_s10, [#allocation3], %s510_s19, %s510_s19, %s511_s20  }
  0x13   :  { %s512_s23 = smov [#allocation5]   ;;  %s459_s27 = scalar_lea.hbm %s697_s1, 96 }
  0x14   :  { %s27_s24 = sshll.u32 %s512_s23, 4  ;;  %p460_p8 = scmp.ne.s32.totalorder %s697_s1, %s459_s27  ;;  %s28_s24 = int_to_ptr.vmem [resolvable:$true] %s27_s24 }
  0x15   :  { %p463_p9 = scmp.lt.u32.totalorder %s459_s27, %s697_s1 }
  0x17   :  { %p465_p10 = pnand %p463_p9, %p460_p8 }
  0x19   :  { %468 = shalt.err (!%p465_p10)
}
  0x1a   :  { %s469_s4 = scalar_lea.vmem %s28_s24, 96  ;;  %p474_p12 = scmp.lt.s32.totalorder %s28_s24, %s28_s24 }
  0x1b   :  { %p470_p11 = scmp.ne.s32.totalorder %s28_s24, %s469_s4  ;;  %p475_p13 = scmp.lt.s32.totalorder %s469_s4, %s469_s4 }
  0x1d   :  { %p476_p0 = por %p475_p13, %p474_p12 }
  0x1f   :  { %p477_p1 = pnand %p476_p0, %p470_p11 }
  0x21   :  { %480 = shalt.err (!%p477_p1)
}
  0x22   :  { %s513_s0 = smov 48   ;;  %s514_s5 = smov 3  }
  0x23   :  { %33 = dma.hbm_to_vmem [thread:$0]  %s697_s1, 96, %s28_s24, [#allocation6], %s513_s0, %s513_s0, %s514_s5  }
  0x24   :  { %503 = dma.done.wait [#allocation3], 1536  }
  0x25   :  { %504 = vsyncadd [#allocation3], 4294965760 }
  0x26   :  { %505 = dma.done.wait [#allocation6], 96  }
  0x27   :  { %506 = vsyncadd [#allocation6], 4294967200  ;;  %v559_v0 = vld [vmem:[#allocation2] sm:$0xff]  ;;  %v561_v1 = vld [vmem:[#allocation2 + $0x8] sm:$0xff]  ;;  %v192_v39 = vlaneseq  ;;  %s516_s1 = smov [#allocation7]  }
  0x28   :  { %v563_v2 = vld [vmem:[#allocation2 + $0x10] sm:$0xff]  ;;  %v565_v3 = vld [vmem:[#allocation2 + $0x18] sm:$0xff]  ;;  %v567_v4 = vld [vmem:[#allocation2 + $0x20] sm:$0xff]  ;;  %s380_s8 = sshll.u32 %s516_s1, 4  ;;  %s381_s8 = int_to_ptr.vmem [resolvable:$true] %s380_s8 }
  0x29   :  { %v569_v5 = vld [vmem:[#allocation2 + $0x28] sm:$0xff]  ;;  %v571_v6 = vld [vmem:[#allocation2 + $0x30] sm:$0xff]  ;;  %v573_v7 = vld [vmem:[#allocation2 + $0x38] sm:$0xff]  ;;  %v54_v9 = vmax.f32 %v559_v0, %v565_v3  ;;  %v61_v10 = vmax.f32 %v561_v1, %v567_v4  ;;  %v602_v52 = vshrl.u32 %v192_v39, 7  ;;  %vm371_vm13 = vcmp.lt.s32.totalorder %v192_v39, 384  ;;  %s481_s9 = scalar_lea.vmem %s381_s8, 96  ;;  %p486_p3 = scmp.lt.s32.totalorder %s381_s8, %s381_s8 }
  0x2a   :  { %v575_v8 = vld [vmem:[#allocation2 + $0x40] sm:$0xff]  ;;  %v68_v11 = vmax.f32 %v563_v2, %v569_v5  ;;  %v583_v12 = vld [vmem:[#allocation2 + $0x48] sm:$0xff]  ;;  %v585_v13 = vld [vmem:[#allocation2 + $0x50] sm:$0xff]  ;;  %p482_p2 = scmp.ne.s32.totalorder %s381_s8, %s481_s9  ;;  %p487_p4 = scmp.lt.s32.totalorder %s481_s9, %s481_s9 }
  0x2b   :  { %v587_v14 = vld [vmem:[#allocation2 + $0x58] sm:$0xff]  ;;  %v55_v15 = vrot.slane %v54_v9, 4  ;;  %v62_v16 = vrot.slane %v61_v10, 4  ;;  %v75_v17 = vmax.f32 %v571_v6, %v583_v12  ;;  %v82_v18 = vmax.f32 %v573_v7, %v585_v13 }
  0x2c   :  { %v69_v19 = vrot.slane %v68_v11, 4  ;;  %v89_v20 = vmax.f32 %v575_v8, %v587_v14  ;;  %p488_p5 = por %p487_p4, %p486_p3 }
  0x2d   :  { %v56_v21 = vmax.f32 %v54_v9, %v55_v15  ;;  %v63_v22 = vmax.f32 %v61_v10, %v62_v16  ;;  %v76_v23 = vrot.slane %v75_v17, 4  ;;  %v83_v24 = vrot.slane %v82_v18, 4 }
  0x2e   :  { %v70_v25 = vmax.f32 %v68_v11, %v69_v19  ;;  %v90_v26 = vrot.slane %v89_v20, 4  ;;  %v197_v9 = vsub.s32 0, %v602_v52  ;;  %v201_v19 = vsub.s32 1, %v602_v52  ;;  %p489_p6 = pnand %p488_p5, %p482_p2 }
  0x2f   :  { %v57_v27 = vrot.slane %v56_v21, 2  ;;  %v64_v28 = vrot.slane %v63_v22, 2  ;;  %v77_v29 = vmax.f32 %v75_v17, %v76_v23  ;;  %v84_v30 = vmax.f32 %v82_v18, %v83_v24 }
  0x30   :  { %v71_v31 = vrot.slane %v70_v25, 2  ;;  %v91_v32 = vmax.f32 %v89_v20, %v90_v26  ;;  %v52_v20 = vld [vmem:[#allocation5] sm:$0x7]  ;;  %v205_v23 = vsub.s32 2, %v602_v52  ;;  %v53_v26 = vld [vmem:[#allocation5 + $0x3] sm:$0x7] }
  0x31   :  { %v58_v33 = vmax.f32 %v56_v21, %v57_v27  ;;  %v65_v34 = vmax.f32 %v63_v22, %v64_v28  ;;  %v78_v35 = vrot.slane %v77_v29, 2  ;;  %v85_v36 = vrot.slane %v84_v30, 2 }
  0x32   :  { %v72_v37 = vmax.f32 %v70_v25, %v71_v31  ;;  %v92_v38 = vrot.slane %v91_v32, 2  ;;  %v202_v31 = vrot.slane %v52_v20, %v201_v19 }
  0x33   :  { %v59_v40 = vrot.slane %v58_v33, 1  ;;  %v66_v41 = vrot.slane %v65_v34, 1  ;;  %v79_v42 = vmax.f32 %v77_v29, %v78_v35  ;;  %v86_v43 = vmax.f32 %v84_v30, %v85_v36 }
  0x34   :  { %v73_v44 = vrot.slane %v72_v37, 1  ;;  %v93_v45 = vmax.f32 %v91_v32, %v92_v38  ;;  %v198_v30 = vrot.slane %v52_v20, %v197_v9  ;;  %v210_v36 = vrot.slane %v53_v26, %v197_v9 }
  0x35   :  { %v595_v46 = vmax.f32 %v58_v33, %v59_v40  ;;  %v597_v47 = vmax.f32 %v65_v34, %v66_v41  ;;  %v80_v48 = vrot.slane %v79_v42, 1  ;;  %v87_v49 = vrot.slane %v86_v43, 1 }
  0x36   :  { %v599_v50 = vmax.f32 %v72_v37, %v73_v44  ;;  %v94_v51 = vrot.slane %v93_v45, 1  ;;  %v194_v33 = vadd.s32 8, %v602_v52  ;;  %v206_v34 = vrot.slane %v52_v20, %v205_v23 }
  0x37   :  { %v604_v53 = vmax.f32 %v79_v42, %v80_v48  ;;  %v606_v54 = vmax.f32 %v86_v43, %v87_v49  ;;  %v96_v55 = vsub.f32 %v559_v0, %v595_v46  ;;  %v97_v56 = vsub.f32 %v561_v1, %v597_v47 }
  0x38   :  { %v612_v57 = vmax.f32 %v93_v45, %v94_v51  ;;  %v98_v58 = vsub.f32 %v563_v2, %v599_v50  ;;  %v99_v59 = vsub.f32 %v565_v3, %v595_v46  ;;  %v100_v60 = vsub.f32 %v567_v4, %v597_v47 }
  0x39   :  { %v101_v61 = vsub.f32 %v569_v5, %v599_v50  ;;  %v102_v62 = vsub.f32 %v571_v6, %v604_v53  ;;  %v108_v63 = vmul.f32 1.442695, %v96_v55  ;;  %v103_v10 = vsub.f32 %v573_v7, %v606_v54 }
  0x3a   :  { %v110_v11 = vmul.f32 1.442695, %v97_v56  ;;  %v112_v15 = vmul.f32 1.442695, %v98_v58  ;;  %v114_v16 = vmul.f32 1.442695, %v99_v59  ;;  %v104_v17 = vsub.f32 %v575_v8, %v612_v57 }
  0x3b   :  { %401 = vpow2.f32 %v108_v63  ;;  %v116_v18 = vmul.f32 1.442695, %v100_v60  ;;  %v105_v21 = vsub.f32 %v583_v12, %v604_v53  ;;  %v118_v22 = vmul.f32 1.442695, %v101_v61 }
  0x3c   :  { %403 = vpow2.f32 %v110_v11  ;;  %v106_v24 = vsub.f32 %v585_v13, %v606_v54  ;;  %v120_v25 = vmul.f32 1.442695, %v102_v62  ;;  %v107_v27 = vsub.f32 %v587_v14, %v612_v57 }
  0x3d   :  { %405 = vpow2.f32 %v112_v15  ;;  %v122_v28 = vmul.f32 1.442695, %v103_v10  ;;  %v124_v29 = vmul.f32 1.442695, %v104_v17  ;;  %v126_v32 = vmul.f32 1.442695, %v105_v21 }
  0x3e   :  { %407 = vpow2.f32 %v114_v16  ;;  %v128_v35 = vmul.f32 1.442695, %v106_v24  ;;  %v214_v37 = vrot.slane %v53_v26, %v201_v19  ;;  %v130_v38 = vmul.f32 1.442695, %v107_v27 }
  0x3f   :  { %409 = vpow2.f32 %v116_v18  ;;  %v218_v40 = vrot.slane %v53_v26, %v205_v23  ;;  %vm219_vm0 = vcmp.eq.s32.totalorder %v602_v52, %v198_v30  ;;  %vm220_vm1 = vcmp.eq.s32.totalorder %v602_v52, %v202_v31 }
  0x40   :  { %411 = vpow2.f32 %v118_v22  ;;  %vm221_vm2 = vcmp.eq.s32.totalorder %v602_v52, %v206_v34  ;;  %vm222_vm3 = vcmp.eq.s32.totalorder %v194_v33, %v198_v30  ;;  %vm223_vm4 = vcmp.eq.s32.totalorder %v194_v33, %v202_v31 }
  0x41   :  { %413 = vpow2.f32 %v120_v25  ;;  %vm224_vm5 = vcmp.eq.s32.totalorder %v194_v33, %v206_v34  ;;  %vm225_vm6 = vcmp.eq.s32.totalorder %v602_v52, %v210_v36  ;;  %vm226_vm7 = vcmp.eq.s32.totalorder %v602_v52, %v214_v37 }
  0x42   :  { %415 = vpow2.f32 %v122_v28  ;;  %vm227_vm8 = vcmp.eq.s32.totalorder %v602_v52, %v218_v40  ;;  %vm228_vm9 = vcmp.eq.s32.totalorder %v194_v33, %v210_v36  ;;  %vm229_vm10 = vcmp.eq.s32.totalorder %v194_v33, %v214_v37 }
  0x43   :  { %417 = vpow2.f32 %v124_v29  ;;  %v231_v44 = vsel %vm219_vm0, %v559_v0, 0.0  ;;  %v232_v45 = vsel %vm220_vm1, %v561_v1, 0.0  ;;  %v234_v48 = vsel %vm222_vm3, %v565_v3, 0.0 }
  0x44   :  { %419 = vpow2.f32 %v126_v32  ;;  %v235_v49 = vsel %vm223_vm4, %v567_v4, 0.0  ;;  %vm230_vm11 = vcmp.eq.s32.totalorder %v194_v33, %v218_v40  ;;  %v233_v55 = vsel %vm221_vm2, %v563_v2, 0.0 }
  0x45   :  { %v402_v41 = vpop.eup %401  ;;  %421 = vpow2.f32 %v128_v35  ;;  %v236_v56 = vsel %vm224_vm5, %v569_v5, 0.0  ;;  %v237_v0 = vsel %vm225_vm6, %v571_v6, 0.0  ;;  %v238_v1 = vsel %vm226_vm7, %v573_v7, 0.0 }
  0x46   :  { %v404_v42 = vpop.eup %403  ;;  %423 = vpow2.f32 %v130_v38  ;;  %v240_v3 = vsel %vm228_vm9, %v583_v12, 0.0  ;;  %v241_v4 = vsel %vm229_vm10, %v585_v13, 0.0  ;;  %v239_v2 = vsel %vm227_vm8, %v575_v8, 0.0 }
  0x47   :  { %v406_v43 = vpop.eup %405  ;;  %v243_v5 = vadd.f32 %v234_v48, %v231_v44  ;;  %v250_v62 = vadd.f32 %v235_v49, %v232_v45  ;;  %v242_v10 = vsel %vm230_vm11, %v587_v14, 0.0  ;;  %v257_v11 = vadd.f32 %v236_v56, %v233_v55 }
  0x48   :  { %v408_v51 = vpop.eup %407  ;;  %v264_v12 = vadd.f32 %v240_v3, %v237_v0  ;;  %v271_v16 = vadd.f32 %v241_v4, %v238_v1  ;;  %v278_v22 = vadd.f32 %v242_v10, %v239_v2 }
  0x49   :  { %v410_v58 = vpop.eup %409  ;;  %v132_v59 = vadd.f32 %v408_v51, %v402_v41  ;;  %v244_v21 = vrot.slane %v243_v5, 4  ;;  %v251_v8 = vrot.slane %v250_v62, 4  ;;  %v258_v27 = vrot.slane %v257_v11, 4 }
  0x4a   :  { %v412_v60 = vpop.eup %411  ;;  %v139_v61 = vadd.f32 %v410_v58, %v404_v42  ;;  %v265_v30 = vrot.slane %v264_v12, 4  ;;  %v272_v31 = vrot.slane %v271_v16, 4  ;;  %v279_v51 = vrot.slane %v278_v22, 4 }
  0x4b   :  { %v414_v63 = vpop.eup %413  ;;  %v133_v6 = vrot.slane %v132_v59, 4  ;;  %v146_v9 = vadd.f32 %v412_v60, %v406_v43  ;;  %v245_v38 = vadd.f32 %v244_v21, %v243_v5  ;;  %v252_v40 = vadd.f32 %v251_v8, %v250_v62 }
  0x4c   :  { %v416_v7 = vpop.eup %415  ;;  %v140_v15 = vrot.slane %v139_v61, 4  ;;  %v259_v49 = vadd.f32 %v258_v27, %v257_v11  ;;  %v273_v10 = vadd.f32 %v272_v31, %v271_v16  ;;  %v515_v16 = vmov 1966171168  }
  0x4d   :  { %v418_v13 = vpop.eup %417  ;;  %v134_v17 = vadd.f32 %v133_v6, %v132_v59  ;;  %v147_v18 = vrot.slane %v146_v9, 4  ;;  %v246_v3 = vrot.slane %v245_v38, 2  ;;  %v253_v4 = vrot.slane %v252_v40, 2 }
  0x4e   :  { %v420_v19 = vpop.eup %419  ;;  %v141_v20 = vadd.f32 %v140_v15, %v139_v61  ;;  %v260_v62 = vrot.slane %v259_v49, 2  ;;  %v280_v15 = vadd.f32 %v279_v51, %v278_v22  ;;  %v323_v27 = vunpack.c.l.s4 %v515_v16 }
  0x4f   :  { %v422_v23 = vpop.eup %421  ;;  %v135_v24 = vrot.slane %v134_v17, 2  ;;  %v148_v25 = vadd.f32 %v147_v18, %v146_v9  ;;  %v153_v26 = vadd.f32 %v420_v19, %v414_v63  ;;  %v266_v63 = vadd.f32 %v265_v30, %v264_v12 }
  0x50   :  { %v424_v28 = vpop.eup %423  ;;  %v142_v14 = vrot.slane %v141_v20, 2  ;;  %v160_v29 = vadd.f32 %v422_v23, %v416_v7  ;;  %v247_v7 = vadd.f32 %v246_v3, %v245_v38  ;;  %v254_v18 = vadd.f32 %v253_v4, %v252_v40 }
  0x51   :  { %v136_v32 = vadd.f32 %v135_v24, %v134_v17  ;;  %v149_v33 = vrot.slane %v148_v25, 2  ;;  %v154_v34 = vrot.slane %v153_v26, 4  ;;  %v167_v35 = vadd.f32 %v424_v28, %v418_v13 }
  0x52   :  { %v143_v36 = vadd.f32 %v142_v14, %v141_v20  ;;  %v161_v37 = vrot.slane %v160_v29, 4  ;;  %v261_v20 = vadd.f32 %v260_v62, %v259_v49  ;;  %v267_v21 = vrot.slane %v266_v63, 2 }
  0x53   :  { %v137_v41 = vrot.slane %v136_v32, 1  ;;  %v150_v42 = vadd.f32 %v149_v33, %v148_v25  ;;  %v155_v43 = vadd.f32 %v154_v34, %v153_v26  ;;  %v168_v44 = vrot.slane %v167_v35, 4 }
  0x54   :  { %v144_v45 = vrot.slane %v143_v36, 1  ;;  %v162_v48 = vadd.f32 %v161_v37, %v160_v29  ;;  %v274_v23 = vrot.slane %v273_v10, 2  ;;  %v248_v24 = vrot.slane %v247_v7, 1 }
  0x55   :  { %v138_v55 = vadd.f32 %v137_v41, %v136_v32  ;;  %v151_v56 = vrot.slane %v150_v42, 1  ;;  %v156_v0 = vrot.slane %v155_v43, 2  ;;  %v169_v58 = vadd.f32 %v168_v44, %v167_v35 }
  0x56   :  { %v145_v59 = vadd.f32 %v144_v45, %v143_v36  ;;  %v163_v1 = vrot.slane %v162_v48, 2  ;;  %v281_v25 = vrot.slane %v280_v15, 2  ;;  %v255_v12 = vrot.slane %v254_v18, 1 }
  0x57   :  { %v152_v60 = vadd.f32 %v151_v56, %v150_v42  ;;  %v157_v61 = vadd.f32 %v156_v0, %v155_v43  ;;  %v170_v2 = vrot.slane %v169_v58, 2  ;;  %425 = vlog2.f32 %v138_v55 }
  0x58   :  { %v164_v5 = vadd.f32 %v163_v1, %v162_v48  ;;  %427 = vlog2.f32 %v145_v59  ;;  %v292_v26 = vand.u32 127, %v192_v39  ;;  %v262_v28 = vrot.slane %v261_v20, 1 }
  0x59   :  { %v158_v6 = vrot.slane %v157_v61, 1  ;;  %v171_v9 = vadd.f32 %v170_v2, %v169_v58  ;;  %429 = vlog2.f32 %v152_v60  ;;  %v268_v22 = vadd.f32 %v267_v21, %v266_v63 }
  0x5a   :  { %v165_v11 = vrot.slane %v164_v5, 1  ;;  %v275_v29 = vadd.f32 %v274_v23, %v273_v10  ;;  %v249_v32 = vadd.f32 %v248_v24, %v247_v7  ;;  %v282_v33 = vadd.f32 %v281_v25, %v280_v15 }
  0x5b   :  { %v159_v13 = vadd.f32 %v158_v6, %v157_v61  ;;  %v172_v17 = vrot.slane %v171_v9, 1  ;;  %v256_v36 = vadd.f32 %v255_v12, %v254_v18  ;;  %v294_v37 = vadd.s32 256, %v292_v26 }
  0x5c   :  { %v166_v19 = vadd.f32 %v165_v11, %v164_v5  ;;  %v324_v38 = vunpack.c.0.s8 %v323_v27  ;;  %v263_v42 = vadd.f32 %v262_v28, %v261_v20  ;;  %v269_v43 = vrot.slane %v268_v22, 1 }
  0x5d   :  { %v173_v8 = vadd.f32 %v172_v17, %v171_v9  ;;  %431 = vlog2.f32 %v159_v13  ;;  %v276_v45 = vrot.slane %v275_v29, 1  ;;  %v283_v49 = vrot.slane %v282_v33, 1 }
  0x5e   :  { %433 = vlog2.f32 %v166_v19  ;;  %vm302_vm12 = vcmp.lt.s32.totalorder %v294_v37, 300  ;;  %v327_v0 = vsub.s32 %v324_v38, %v602_v52  ;;  %v270_v1 = vadd.f32 %v269_v43, %v268_v22 }
  0x5f   :  { %435 = vlog2.f32 %v173_v8  ;;  %v277_v60 = vadd.f32 %v276_v45, %v275_v29  ;;  %v284_v5 = vadd.f32 %v283_v49, %v282_v33 }
  0x61   :  { %v426_v14 = vpop.eup %425 }
  0x62   :  { %v428_v30 = vpop.eup %427  ;;  %v175_v31 = vmul.f32 0.6931472, %v426_v14 }
  0x63   :  { %v430_v34 = vpop.eup %429  ;;  %v177_v35 = vmul.f32 0.6931472, %v428_v30 }
  0x64   :  { %v179_v40 = vmul.f32 0.6931472, %v430_v34  ;;  %v186_v41 = vadd.f32 %v175_v31, %v595_v46 }
  0x65   :  { %v187_v44 = vadd.f32 %v177_v35, %v597_v47 }
  0x66   :  { %v188_v48 = vadd.f32 %v179_v40, %v599_v50  ;;  %v285_v51 = vsub.f32 %v186_v41, %v249_v32 }
  0x67   :  { %v432_v55 = vpop.eup %431  ;;  %v286_v56 = vsub.f32 %v187_v44, %v256_v36 }
  0x68   :  { %v434_v58 = vpop.eup %433  ;;  %v181_v59 = vmul.f32 0.6931472, %v432_v55  ;;  %v287_v3 = vsub.f32 %v188_v48, %v263_v42 }
  0x69   :  { %v436_v4 = vpop.eup %435  ;;  %v183_v46 = vmul.f32 0.6931472, %v434_v58  ;;  %v321_v61 = vcombine.low %v285_v51, %v286_v56 }
  0x6a   :  { %v185_v2 = vmul.f32 0.6931472, %v436_v4  ;;  %v189_v47 = vadd.f32 %v181_v59, %v604_v53  ;;  %v311_v50 = vsel %vm302_vm12, %v287_v3, 0.0 }
  0x6b   :  { %v190_v62 = vadd.f32 %v183_v46, %v606_v54  ;;  %v328_v63 = vrot.slane %v321_v61, %v327_v0  ;;  %v335_v6 = vrot.slane %v311_v50, %v327_v0 }
  0x6c   :  { %v191_v52 = vadd.f32 %v185_v2, %v612_v57  ;;  %v288_v9 = vsub.f32 %v189_v47, %v270_v1 }
  0x6d   :  { %v289_v10 = vsub.f32 %v190_v62, %v277_v60  ;;  %v336_v11 = vcombine.low %v328_v63, %v335_v6 }
  0x6e   :  { %v290_v7 = vsub.f32 %v191_v52, %v284_v5 }
  0x6f   :  { %v343_v15 = vrot.slane %v336_v11, %v327_v0  ;;  %v344_v13 = vcombine.low %v288_v9, %v289_v10 }
  0x70   :  { %v314_v17 = vsel %vm302_vm12, %v290_v7, 0.0 }
  0x71   :  { %v351_v53 = vrot.slane %v344_v13, %v327_v0  ;;  %v358_v18 = vrot.slane %v314_v17, %v327_v0  ;;  %373 = vst.msk [vmem:[#allocation7] sm:$0x7] %vm371_vm13, %v343_v15 }
  0x73   :  { %v359_v54 = vcombine.low %v351_v53, %v358_v18 }
  0x75   :  { %v366_v19 = vrot.slane %v359_v54, %v327_v0 }
  0x77   :  { %374 = vst.msk [vmem:[#allocation7 + $0x3] sm:$0x7] %vm371_vm13, %v366_v19 }
  0x78   :  { %492 = shalt.err (!%p489_p6)
}
  0x79   :  { %s493_s12 = scalar_lea.hbm %s698_s2, 96 }
  0x7a   :  { %p494_p7 = scmp.ne.s32.totalorder %s698_s2, %s493_s12  ;;  %p497_p8 = scmp.lt.u32.totalorder %s493_s12, %s698_s2 }
  0x7c   :  { %p499_p9 = pnand %p497_p8, %p494_p7 }
  0x7e   :  { %502 = shalt.err (!%p499_p9)
}
  0x7f   :  { %386 = dma.vmem_to_hbm [thread:$0]  %s381_s8, 96, %s698_s2, [#allocation4], %s513_s0, %s513_s0, %s514_s5  }
  0x80   :  { %507 = dma.done.wait [#allocation4], 96  }
  0x81   :  { %508 = vsyncadd [#allocation4], 4294967200 }
  0x82   :  { %390 = vsyncpa [#allocation3], 1 }
  0x83   :  { %391 = vsyncpa [#allocation6], 1 }
  0x84   :  { %392 = vsyncpa [#allocation4], 1 }

</bundles_post_ra>
